<compile_context>
chip_gen: v7x
topology: tpu7x:2x2x1
jax: 0.10.0
libtpu: 0.0.40
codegen_flags: <defaults>
</compile_context>

<pallas_src>
from typing import NamedTuple

import jax
import jax.numpy as jnp
from jax import lax
from jax.experimental import pallas as pl
from jax.experimental.pallas import tpu as pltpu


def _round_up(x: int, m: int) -> int:
    return (x + m - 1) // m * m


def _sublane(dtype) -> int:
    # Minimum second-to-last tile dim: 8 (4-byte), 16 (2-byte), 32 (1-byte).
    return max(8, 32 // jnp.dtype(dtype).itemsize)


class Word2VecParams(NamedTuple):
    w_t: jax.Array      # [V_p, E_p] = W.weight.T, zero-padded ("embedding table")
    wt: jax.Array       # [V_p, E_p] = WT.weight,  zero-padded (output projection)
    vocab: int
    embed: int
    v_pad: int
    e_pad: int
    tile_v: int


def prepare_word2vec_params(w_weight, wt_weight, *, dtype=None, tile_v=1024):
    """One-time (init-time) preprocessing: transpose + pad + optional cast.

    Hoisted out of the per-forward path so no HBM-sized jnp.pad happens per call.
    """
    E, V = w_weight.shape
    assert wt_weight.shape == (V, E)
    dtype = jnp.dtype(dtype) if dtype is not None else jnp.dtype(w_weight.dtype)

    E_p = _round_up(E, 128)
    tv = min(_round_up(tile_v, 128), _round_up(V, 128))
    V_p = _round_up(V, tv)

    w_t = jnp.pad(w_weight.T.astype(dtype), ((0, V_p - V), (0, E_p - E)))
    wt = jnp.pad(wt_weight.astype(dtype), ((0, V_p - V), (0, E_p - E)))
    return Word2VecParams(w_t, wt, V, E, V_p, E_p, tv)


# ---------------------------------------------------------------------------
# Stage 1 (dense, general X): hidden = X @ W^T   with W^T pre-stored as [V_p, E_p]
# Grid: (batch tiles, vocab-in tiles); vocab-in is the reduction axis (last),
# accumulated in an f32 VMEM scratch.
# ---------------------------------------------------------------------------
def _hidden_kernel(x_ref, wt_in_ref, h_ref, acc_ref):
    k = pl.program_id(1)

    @pl.when(k == 0)
    def _():
        acc_ref[...] = jnp.zeros_like(acc_ref)

    acc_ref[...] += lax.dot_general(
        x_ref[...], wt_in_ref[...],
        dimension_numbers=(((1,), (0,)), ((), ())),
        preferred_element_type=jnp.float32)

    @pl.when(k == pl.num_programs(1) - 1)
    def _():
        h_ref[...] = acc_ref[...].astype(h_ref.dtype)


# ---------------------------------------------------------------------------
# Stage 1 (one-hot fast path): hidden[b] = W^T[token_ids[b]]
# Scalar-prefetched ids + manual row DMAs from HBM (memory_space=pl.ANY).
# Issue all row copies, then drain them (they all signal the same semaphore).
# ---------------------------------------------------------------------------
def _gather_kernel(ids_ref, w_t_hbm, h_ref, sem):
    n_rows = h_ref.shape[0]

    def _row_copy(b):
        return pltpu.make_async_copy(
            w_t_hbm.at[pl.ds(ids_ref[b], 1), :],
            h_ref.at[pl.ds(b, 1), :],
            sem)

    def _start(b, carry):
        _row_copy(b).start()
        return carry

    def _wait(b, carry):
        _row_copy(b).wait()
        return carry

    lax.fori_loop(0, n_rows, _start, 0)
    lax.fori_loop(0, n_rows, _wait, 0)


# ---------------------------------------------------------------------------
# Stage 2: out = hidden @ WT^T     hidden: [B_p, E_p], WT: [V_p, E_p]
# Grid: (vocab-out tiles, batch tiles) -- vocab-out OUTER so each WT tile is
# DMA'd from HBM exactly once and reused across all batch tiles.
# ---------------------------------------------------------------------------
def _output_kernel(h_ref, wt_ref, o_ref):
    h = h_ref[...]
    w = wt_ref[...]
    if h.dtype != w.dtype:                      # static (trace-time) branch
        ct = jnp.promote_types(h.dtype, w.dtype)
        h = h.astype(ct)
        w = w.astype(ct)
    o_ref[...] = lax.dot_general(
        h, w,
        dimension_numbers=(((1,), (1,)), ((), ())),
        preferred_element_type=jnp.float32).astype(o_ref.dtype)


def _output_projection(hidden_p, params: Word2VecParams, *, tm, vmem_limit_bytes,
                       out_dtype=jnp.float32):
    B_p, E_p = hidden_p.shape
    V_p, tv = params.v_pad, params.tile_v
    n_b = B_p // tm
    n_v = V_p // tv
    h_bytes = jnp.dtype(hidden_p.dtype).itemsize
    w_bytes = jnp.dtype(params.wt.dtype).itemsize

    return pl.pallas_call(
        _output_kernel,
        out_shape=jax.ShapeDtypeStruct((B_p, V_p), out_dtype),
        grid_spec=pltpu.PrefetchScalarGridSpec(
            num_scalar_prefetch=0,
            grid=(n_v, n_b),                       # WT-bearing axis outer
            in_specs=[
                pl.BlockSpec((tm, E_p), lambda j, i: (i, 0)),   # hidden tile
                pl.BlockSpec((tv, E_p), lambda j, i: (j, 0)),   # WT tile
            ],
            out_specs=pl.BlockSpec((tm, tv), lambda j, i: (i, j)),
        ),
        compiler_params=pltpu.CompilerParams(
            dimension_semantics=("parallel", "parallel"),
            vmem_limit_bytes=vmem_limit_bytes,
        ),
        cost_estimate=pl.CostEstimate(
            flops=2 * B_p * E_p * V_p,
            transcendentals=0,
            bytes_accessed=(n_v * B_p * E_p * h_bytes        # hidden re-read per j
                            + V_p * E_p * w_bytes            # WT streamed once
                            + B_p * V_p * jnp.dtype(out_dtype).itemsize),
        ),
    )(hidden_p, params.wt)


def word2vec_forward(x, params: Word2VecParams, *, tile_m=512,
                     vmem_limit_bytes=48 * 1024 * 1024):
    """General forward: out = (X @ W^T) @ WT^T for arbitrary dense X [B, V]."""
    B, V = x.shape
    assert V == params.vocab
    x = x.astype(params.w_t.dtype)

    sub = _sublane(x.dtype)
    tm = min(_round_up(tile_m, sub), _round_up(B, sub))
    B_p = _round_up(B, tm)
    V_p, E_p, tv = params.v_pad, params.e_pad, params.tile_v

    x_p = jnp.pad(x, ((0, B_p - B), (0, V_p - V)))     # activation-only pad
    n_b = B_p // tm
    n_k = V_p // tv
    x_bytes = jnp.dtype(x.dtype).itemsize
    w_bytes = jnp.dtype(params.w_t.dtype).itemsize

    hidden = pl.pallas_call(
        _hidden_kernel,
        out_shape=jax.ShapeDtypeStruct((B_p, E_p), jnp.float32),   # keep hidden f32
        grid_spec=pltpu.PrefetchScalarGridSpec(
            num_scalar_prefetch=0,
            grid=(n_b, n_k),
            in_specs=[
                pl.BlockSpec((tm, tv), lambda i, k: (i, k)),     # X tile
                pl.BlockSpec((tv, E_p), lambda i, k: (k, 0)),    # W^T tile
            ],
            out_specs=pl.BlockSpec((tm, E_p), lambda i, k: (i, 0)),
            scratch_shapes=[pltpu.VMEM((tm, E_p), jnp.float32)],
        ),
        compiler_params=pltpu.CompilerParams(
            dimension_semantics=("parallel", "arbitrary"),
            vmem_limit_bytes=vmem_limit_bytes,
        ),
        cost_estimate=pl.CostEstimate(
            flops=2 * B_p * V_p * E_p,
            transcendentals=0,
            bytes_accessed=(B_p * V_p * x_bytes
                            + n_b * V_p * E_p * w_bytes   # W re-streamed per batch tile
                            + B_p * E_p * 4),
        ),
    )(x_p, params.w_t)

    out_p = _output_projection(hidden, params, tm=tm,
                               vmem_limit_bytes=vmem_limit_bytes)
    return out_p[:B, :V]


def word2vec_forward_onehot(token_ids, params: Word2VecParams, *, tile_m=512,
                            vmem_limit_bytes=48 * 1024 * 1024):
    """Fast path when X is one-hot: stage 1 is a DMA row gather of W^T."""
    (B,) = token_ids.shape
    dtype = params.w_t.dtype
    sub = _sublane(dtype)
    tm = min(_round_up(tile_m, sub), _round_up(B, sub))
    B_p = _round_up(B, tm)
    E_p = params.e_pad
    w_bytes = jnp.dtype(dtype).itemsize

    ids = jnp.pad(token_ids.astype(jnp.int32), ((0, B_p - B),))

    hidden = pl.pallas_call(
        _gather_kernel,
        out_shape=jax.ShapeDtypeStruct((B_p, E_p), dtype),
        grid_spec=pltpu.PrefetchScalarGridSpec(
            num_scalar_prefetch=1,                       # ids -> SMEM
            grid=(1,),
            in_specs=[pl.BlockSpec(memory_space=pl.ANY)],  # W^T stays in HBM
            out_specs=pl.BlockSpec((B_p, E_p), lambda i, ids_ref: (0, 0)),
            scratch_shapes=[pltpu.SemaphoreType.DMA(())],
        ),
        compiler_params=pltpu.CompilerParams(
            dimension_semantics=("arbitrary",),
            vmem_limit_bytes=vmem_limit_bytes,
        ),
        cost_estimate=pl.CostEstimate(
            flops=0,
            transcendentals=0,
            bytes_accessed=2 * B_p * E_p * w_bytes,
        ),
    )(ids, params.w_t)

    out_p = _output_projection(hidden, params, tm=tm,
                               vmem_limit_bytes=vmem_limit_bytes)
    return out_p[:B, :params.vocab]


if __name__ == "__main__":
    # Small, deterministic setup consistent with the module's __init__ shapes.
    batch = 8
    vocab_size = 128
    embedding_size = 32

    key = jax.random.PRNGKey(0)
    k_x, k_w, k_wt = jax.random.split(key, 3)

    token_ids = jax.random.randint(k_x, (batch,), 0, vocab_size)
    x = jax.nn.one_hot(token_ids, vocab_size, dtype=jnp.float32)       # [B, V]

    w_weight = jax.random.uniform(
        k_w, (embedding_size, vocab_size), dtype=jnp.float32,
        minval=-1.0 / jnp.sqrt(vocab_size), maxval=1.0 / jnp.sqrt(vocab_size))
    wt_weight = jax.random.uniform(
        k_wt, (vocab_size, embedding_size), dtype=jnp.float32,
        minval=-1.0 / jnp.sqrt(embedding_size), maxval=1.0 / jnp.sqrt(embedding_size))

    ref = (x @ w_weight.T) @ wt_weight.T

    # One-time parameter prep (pad/transpose hoisted out of the forward path).
    params_f32 = prepare_word2vec_params(w_weight, wt_weight)

    # 1) General dense forward (exact module semantics).
    out_dense = jax.block_until_ready(word2vec_forward(x, params_f32))
    assert out_dense.shape == (batch, vocab_size)
    assert jnp.allclose(out_dense, ref, atol=1e-5, rtol=1e-5), "dense path mismatch"

    # 2) One-hot fast path (row-gather stage 1), same result.
    out_fast = jax.block_until_ready(word2vec_forward_onehot(token_ids, params_f32))
    assert out_fast.shape == (batch, vocab_size)
    assert jnp.allclose(out_fast, ref, atol=1e-5, rtol=1e-5), "one-hot path mismatch"

    # 3) bf16 weight streaming (halves HBM traffic on v5e/v6e/v7x), f32 accumulation.
    params_bf16 = prepare_word2vec_params(w_weight, wt_weight, dtype=jnp.bfloat16)
    out_bf16 = jax.block_until_ready(word2vec_forward_onehot(token_ids, params_bf16))
    assert out_bf16.shape == (batch, vocab_size)
    assert jnp.allclose(out_bf16, ref, atol=1e-2, rtol=5e-2), "bf16 path mismatch"

    print("KERNEL_OK")
</pallas_src>

<mosaic_0001>
module attributes {stable_mosaic.version = 11 : i64} {
  func.func @_hidden_kernel(%arg0: i32, %arg1: i32, %arg2: memref<8x128xf32, #tpu.memory_space<vmem>>, %arg3: memref<128x128xf32, #tpu.memory_space<vmem>>, %arg4: memref<8x128xf32, #tpu.memory_space<vmem>>, %arg5: memref<8x128xf32, #tpu.memory_space<vmem>>) attributes {dimension_semantics = [#tpu.dimension_semantics<parallel>, #tpu.dimension_semantics<arbitrary>], iteration_bounds = array<i64: 1, 1>, scalar_prefetch = 0 : i64, scratch_operands = 1 : i64, tpu.core_type = #tpu.core_type<tc>, window_params = [{transform_indices = @transform_0, window_bounds = array<i64: 8, 128>}, {transform_indices = @transform_1, window_bounds = array<i64: 128, 128>}, {transform_indices = @transform_2, window_bounds = array<i64: 8, 128>}]} {
    %c0_i32 = arith.constant 0 : i32
    %0 = arith.cmpi eq, %arg1, %c0_i32 : i32
    %1 = arith.extui %0 : i1 to i32
    %c0_i32_0 = arith.constant 0 : i32
    %2 = arith.cmpi ne, %1, %c0_i32_0 : i32
    scf.if %2 {
      %cst_10 = arith.constant 0.000000e+00 : f32
      %12 = vector.broadcast %cst_10 : f32 to vector<8x128xf32>
      %c0_11 = arith.constant 0 : index
      %c0_12 = arith.constant 0 : index
      %13 = vector.load %arg5[%c0_11, %c0_12] : memref<8x128xf32, #tpu.memory_space<vmem>>, vector<8x128xf32>
      tpu.vector_store %arg5[%c0_11, %c0_12], %12 {strides = array<i32>} : memref<8x128xf32, #tpu.memory_space<vmem>>, vector<8x128xf32>,
    } else {
    }
    %c0 = arith.constant 0 : index
    %c0_1 = arith.constant 0 : index
    %3 = vector.load %arg5[%c0, %c0_1] : memref<8x128xf32, #tpu.memory_space<vmem>>, vector<8x128xf32>
    %c0_2 = arith.constant 0 : index
    %c0_3 = arith.constant 0 : index
    %4 = vector.load %arg2[%c0_2, %c0_3] : memref<8x128xf32, #tpu.memory_space<vmem>>, vector<8x128xf32>
    %c0_4 = arith.constant 0 : index
    %c0_5 = arith.constant 0 : index
    %5 = vector.load %arg3[%c0_4, %c0_5] : memref<128x128xf32, #tpu.memory_space<vmem>>, vector<128x128xf32>
    %cst = arith.constant dense<0.000000e+00> : vector<8x128xf32>
    %6 = tpu.matmul %4, %5, %cst {dimension_numbers = #tpu.dot_dimension_numbers<[1], [0], [0], [1], [0, 0, 1, 1], [], []>} : vector<8x128xf32>, vector<128x128xf32>, vector<8x128xf32> -> vector<8x128xf32>
    %7 = arith.addf %3, %6 : vector<8x128xf32>
    %c0_6 = arith.constant 0 : index
    %c0_7 = arith.constant 0 : index
    %8 = vector.load %arg5[%c0_6, %c0_7] : memref<8x128xf32, #tpu.memory_space<vmem>>, vector<8x128xf32>
    tpu.vector_store %arg5[%c0_6, %c0_7], %7 {strides = array<i32>} : memref<8x128xf32, #tpu.memory_space<vmem>>, vector<8x128xf32>,
    %c0_i32_8 = arith.constant 0 : i32
    %9 = arith.cmpi eq, %arg1, %c0_i32_8 : i32
    %10 = arith.extui %9 : i1 to i32
    %c0_i32_9 = arith.constant 0 : i32
    %11 = arith.cmpi ne, %10, %c0_i32_9 : i32
    scf.if %11 {
      %c0_10 = arith.constant 0 : index
      %c0_11 = arith.constant 0 : index
      %12 = vector.load %arg5[%c0_10, %c0_11] : memref<8x128xf32, #tpu.memory_space<vmem>>, vector<8x128xf32>
      %c0_12 = arith.constant 0 : index
      %c0_13 = arith.constant 0 : index
      %13 = vector.load %arg4[%c0_12, %c0_13] : memref<8x128xf32, #tpu.memory_space<vmem>>, vector<8x128xf32>
      tpu.vector_store %arg4[%c0_12, %c0_13], %12 {strides = array<i32>} : memref<8x128xf32, #tpu.memory_space<vmem>>, vector<8x128xf32>,
    } else {
    }
    return
  }
  func.func @transform_0(%arg0: i32, %arg1: i32) -> (i32, i32) {
    %c0_i32 = arith.constant 0 : i32
    return %arg0, %arg1 : i32, i32
  }
  func.func @transform_1(%arg0: i32, %arg1: i32) -> (i32, i32) {
    %c0_i32 = arith.constant 0 : i32
    %c0_i32_0 = arith.constant 0 : i32
    return %arg1, %c0_i32 : i32, i32
  }
  func.func @transform_2(%arg0: i32, %arg1: i32) -> (i32, i32) {
    %c0_i32 = arith.constant 0 : i32
    %c0_i32_0 = arith.constant 0 : i32
    return %arg0, %c0_i32 : i32, i32
  }
}

</mosaic_0001>

<bundles_post_ra>
// kernel: tpu_custom_call.1
= control target key start
LH: loop header
LB: loop body
LE: loop exit
PB: predicated region body
PF: predicated region fallthrough
CT: control target
= control target key end

     0   :  { %7 = vsyncpa [#allocation4], 0  ;;  %s376_s0 = inlined_call_operand.hbm [shape: f32[8,128], index: 0, kind: input, shape index: {}]   ;;  %s377_s1 = inlined_call_operand.hbm [shape: f32[128,128], index: 1, kind: input, shape index: {}]   ;;  %s378_s2 = inlined_call_operand.hbm [shape: f32[8,128], index: 2, kind: output, shape index: {}]  }
   0x1   :  { %8 = vsyncpa [#allocation7], 0 }
   0x2   :  { %9 = vsyncpa [#allocation5], 0  ;;  %s310_s9 = smov [#allocation3]   ;;  %s311_s11 = smov [#allocation6]  }
   0x3   :  { %s16_s10 = sshll.u32 %s310_s9, 4  ;;  %s25_s12 = sshll.u32 %s311_s11, 4  ;;  %s17_s10 = int_to_ptr.vmem [resolvable:$true] %s16_s10  ;;  %s333_s12 = int_to_ptr.vmem [resolvable:$true] %s25_s12 }
   0x4   :  { %s238_s15 = scalar_lea.hbm %s376_s0, 128 }
   0x5   :  { %p239_p0 = scmp.ne.s32.totalorder %s376_s0, %s238_s15  ;;  %p242_p1 = scmp.lt.u32.totalorder %s238_s15, %s376_s0 }
   0x7   :  { %p244_p2 = pnand %p242_p1, %p239_p0 }
   0x9   :  { %247 = shalt.err (!%p244_p2)
}
   0xa   :  { %s248_s20 = scalar_lea.vmem %s17_s10, 128  ;;  %p253_p4 = scmp.lt.s32.totalorder %s17_s10, %s17_s10 }
   0xb   :  { %p249_p3 = scmp.ne.s32.totalorder %s17_s10, %s248_s20  ;;  %p254_p5 = scmp.lt.s32.totalorder %s248_s20, %s248_s20 }
   0xd   :  { %p255_p6 = por %p254_p5, %p253_p4 }
   0xf   :  { %p256_p7 = pnand %p255_p6, %p249_p3 }
  0x11   :  { %259 = shalt.err (!%p256_p7)
}
  0x12   :  { %19 = dma.hbm_to_vmem [thread:$0]  %s376_s0, 128, %s17_s10, [#allocation4]  }
  0x13   :  { %s260_s25 = scalar_lea.hbm %s377_s1, 2048 }
  0x14   :  { %p261_p8 = scmp.ne.s32.totalorder %s377_s1, %s260_s25  ;;  %p264_p9 = scmp.lt.u32.totalorder %s260_s25, %s377_s1 }
  0x16   :  { %p266_p10 = pnand %p264_p9, %p261_p8 }
  0x18   :  { %269 = shalt.err (!%p266_p10)
}
  0x19   :  { %s270_s30 = scalar_lea.vmem %s333_s12, 2048  ;;  %p275_p12 = scmp.lt.s32.totalorder %s333_s12, %s333_s12 }
  0x1a   :  { %p271_p11 = scmp.ne.s32.totalorder %s333_s12, %s270_s30  ;;  %p276_p13 = scmp.lt.s32.totalorder %s270_s30, %s270_s30 }
  0x1c   :  { %p277_p0 = por %p276_p13, %p275_p12 }
  0x1e   :  { %p278_p1 = pnand %p277_p0, %p271_p11 }
  0x20   :  { %281 = shalt.err (!%p278_p1)
}
  0x21   :  { %s312_s0 = smov 128   ;;  %s313_s3 = smov 8  }
  0x22   :  { %31 = dma.hbm_to_vmem [thread:$0]  %s377_s1, 2048, %s333_s12, [#allocation7], %s312_s0, %s312_s0, %s313_s3  }
  0x23   :  { %304 = dma.done.wait [#allocation4], 128  }
  0x24   :  { %305 = vsyncadd [#allocation4], 4294967168 }
  0x25   :  { %306 = dma.done.wait [#allocation7], 2048  }
  0x26   :  { %307 = vsyncadd [#allocation7], 4294965248  ;;  %v314_v0 = vmov 0.0|0.0   ;;  %vm315_vm0 = vmmov 0   ;;  %v316_v1 = vmov 0.0   ;;  %v45_v2 = vld [vmem:[#allocation6] sm:$0xff] }
  0x27   :  { %206 = vmatprep.subr.bf16.mxu0 %v314_v0  ;;  %203 = vmatprep.mubr.msk.f32.mxu0 %vm315_vm0, %v316_v1  ;;  %v46_v3 = vld [vmem:[#allocation6 + $0x8] sm:$0xff]  ;;  %v47_v4 = vld [vmem:[#allocation6 + $0x10] sm:$0xff]  ;;  %v48_v6 = vld [vmem:[#allocation6 + $0x18] sm:$0xff]  ;;  %s317_s1 = smov [#allocation8]  }
  0x28   :  { %v207_v5 = vpack.c.bf16 %v46_v3, %v45_v2  ;;  %v210_v7 = vpack.c.bf16 %v48_v6, %v47_v4  ;;  %v49_v8 = vld [vmem:[#allocation6 + $0x20] sm:$0xff]  ;;  %v50_v9 = vld [vmem:[#allocation6 + $0x28] sm:$0xff]  ;;  %v51_v11 = vld [vmem:[#allocation6 + $0x30] sm:$0xff]  ;;  %s144_s6 = sshll.u32 %s317_s1, 4  ;;  %s145_s6 = int_to_ptr.vmem [resolvable:$true] %s144_s6 }
  0x29   :  { %v213_v10 = vpack.c.bf16 %v50_v9, %v49_v8  ;;  %v52_v12 = vld [vmem:[#allocation6 + $0x38] sm:$0xff]  ;;  %v53_v14 = vld [vmem:[#allocation6 + $0x40] sm:$0xff]  ;;  %v54_v15 = vld [vmem:[#allocation6 + $0x48] sm:$0xff]  ;;  %s282_s7 = scalar_lea.vmem %s145_s6, 128  ;;  %p287_p3 = scmp.lt.s32.totalorder %s145_s6, %s145_s6 }
  0x2a   :  { %208 = vmatpush3.bf16.msra.mxu0 %v207_v5  ;;  %v216_v13 = vpack.c.bf16 %v52_v12, %v51_v11  ;;  %v219_v16 = vpack.c.bf16 %v54_v15, %v53_v14  ;;  %v55_v17 = vld [vmem:[#allocation6 + $0x50] sm:$0xff]  ;;  %v56_v18 = vld [vmem:[#allocation6 + $0x58] sm:$0xff]  ;;  %v57_v20 = vld [vmem:[#allocation6 + $0x60] sm:$0xff]  ;;  %p283_p2 = scmp.ne.s32.totalorder %s145_s6, %s282_s7  ;;  %p288_p4 = scmp.lt.s32.totalorder %s282_s7, %s282_s7 }
  0x2b   :  { %209 = vmatprep.subr.bf16.mxu0 %v314_v0  ;;  %v222_v19 = vpack.c.bf16 %v56_v18, %v55_v17  ;;  %v58_v21 = vld [vmem:[#allocation6 + $0x68] sm:$0xff]  ;;  %v59_v23 = vld [vmem:[#allocation6 + $0x70] sm:$0xff]  ;;  %v60_v24 = vld [vmem:[#allocation6 + $0x78] sm:$0xff] }
  0x2c   :  { %v225_v22 = vpack.c.bf16 %v58_v21, %v57_v20  ;;  %v228_v25 = vpack.c.bf16 %v60_v24, %v59_v23  ;;  %v44_v26 = vld [vmem:[#allocation3] sm:$0xff]  ;;  %p289_p5 = por %p288_p4, %p287_p3 }
  0x2e   :  { %211 = vmatpush3.bf16.msra.mxu0 %v210_v7  ;;  %p290_p6 = pnand %p289_p5, %p283_p2 }
  0x2f   :  { %212 = vmatprep.subr.bf16.mxu0 %v314_v0 }
  0x32   :  { %214 = vmatpush3.bf16.msra.mxu0 %v213_v10 }
  0x33   :  { %215 = vmatprep.subr.bf16.mxu0 %v314_v0 }
  0x36   :  { %217 = vmatpush3.bf16.msra.mxu0 %v216_v13 }
  0x37   :  { %218 = vmatprep.subr.bf16.mxu0 %v314_v0 }
  0x3a   :  { %220 = vmatpush3.bf16.msra.mxu0 %v219_v16 }
  0x3b   :  { %221 = vmatprep.subr.bf16.mxu0 %v314_v0 }
  0x3e   :  { %223 = vmatpush3.bf16.msra.mxu0 %v222_v19 }
  0x3f   :  { %224 = vmatprep.subr.bf16.mxu0 %v314_v0 }
  0x42   :  { %226 = vmatpush3.bf16.msra.mxu0 %v225_v22 }
  0x43   :  { %227 = vmatprep.subr.bf16.mxu0 %v314_v0 }
  0x46   :  { %229 = vmatpush3.bf16.msra.mxu0 %v228_v25 }
  0x49   :  { %204 = vmatmul.mubr.f32.vlgmr.msra.gmra.mrb[0].mxu0 %v44_v26 }
 0x11c   :  { %v127_v27 = vpop.f32.mrb[0].mxu0 }
 0x11d   :  { %137 = vst [vmem:[#allocation8] sm:$0xff] %v127_v27  ;;  %v205_v28 = vpop.f32.mrb[1].mxu0 }
 0x11e   :  { %293 = shalt.err (!%p290_p6)
}
 0x11f   :  { %s294_s10 = scalar_lea.hbm %s378_s2, 128 }
 0x120   :  { %p295_p7 = scmp.ne.s32.totalorder %s378_s2, %s294_s10  ;;  %p298_p8 = scmp.lt.u32.totalorder %s294_s10, %s378_s2 }
 0x122   :  { %p300_p9 = pnand %p298_p8, %p295_p7 }
 0x124   :  { %303 = shalt.err (!%p300_p9)
}
 0x125   :  { %147 = dma.vmem_to_hbm [thread:$0]  %s145_s6, 128, %s378_s2, [#allocation5]  }
 0x126   :  { %308 = dma.done.wait [#allocation5], 128  }
 0x127   :  { %309 = vsyncadd [#allocation5], 4294967168 }
 0x128   :  { %151 = vsyncpa [#allocation4], 1 }
 0x129   :  { %152 = vsyncpa [#allocation7], 1 }
 0x12a   :  { %153 = vsyncpa [#allocation5], 1 }

</bundles_post_ra>
